<compile_context>
chip_gen: v6e
topology: v6e:2x2x1
jax: 0.10.0
libtpu: 0.0.40
codegen_flags: <defaults>
</compile_context>

<pallas_src>
import functools

import jax
import jax.numpy as jnp
from jax.experimental import pallas as pl
from jax.experimental.pallas import tpu as pltpu


def _round_up(x, m):
    return (x + m - 1) // m * m


# -----------------------------------------------------------------------------
# Fused kernel: temporal shift (lane-slice selects) staged into VMEM scratch,
# then ONE token-wise Linear matmul on the MXU for the whole block.
#   x_ref / o_ref : (rows, n_tok * c)    -- time steps along the lane axis
#   w_ref         : (c, c)               -- VMEM-resident across the grid
#   b_ref         : (1, c)
#   stage_ref     : (n_tok * row_stride, c)  VMEM scratch (matmul LHS)
# -----------------------------------------------------------------------------
def _fused_shift_linear_kernel(x_ref, w_ref, b_ref, o_ref, stage_ref, *,
                               n_segment, fold, c):
    rows = x_ref.shape[0]                      # block_rows (static)
    n_tok = x_ref.shape[1] // c                # time steps in this block
    n_clips = n_tok // n_segment
    row_stride = stage_ref.shape[0] // n_tok   # 16-aligned per-token row stride

    w = w_ref[...]
    bias = b_ref[...].astype(jnp.float32)      # (1, c)

    # Hoisted once per grid step: channel-group masks folded with the CLS-row
    # bypass (only global spatial row 0 is CLS and skips the shift).  Each
    # token below then costs exactly two selects.
    cid = jax.lax.broadcasted_iota(jnp.int32, (rows, c), 1)
    grow = jax.lax.broadcasted_iota(jnp.int32, (rows, c), 0) + pl.program_id(0) * rows
    not_cls = grow != 0
    mask_next = (cid < fold) & not_cls                       # channels [0, fold)
    mask_prev = (cid >= fold) & (cid < 2 * fold) & not_cls   # channels [fold, 2*fold)

    def stage_clip(clip, dynamic):
        # The shift never crosses clip boundaries, so each clip is
        # self-contained: shift its n_segment tokens and stage them
        # token-major for the single block-wide matmul below.
        for seg in range(n_segment):
            tok = clip * n_segment + seg

            def col(t):
                off = t * c
                return pl.multiple_of(off, 128) if dynamic else off

            cur = x_ref[:, pl.ds(col(tok), c)]
            nxt = x_ref[:, pl.ds(col(tok + 1), c)] if seg + 1 < n_segment else 0.0
            prv = x_ref[:, pl.ds(col(tok - 1), c)] if seg > 0 else 0.0
            shifted = jnp.where(mask_next, nxt, cur)         # zero at clip end
            shifted = jnp.where(mask_prev, prv, shifted)     # zero at clip start
            row0 = tok * row_stride
            if dynamic:
                row0 = pl.multiple_of(row0, 16)
            stage_ref[pl.ds(row0, rows), :] = shifted.astype(stage_ref.dtype)

    if n_clips > 2 and c % 128 == 0:
        # Many clips per block: rolled loop keeps code size / vreg live ranges
        # bounded (lane-aligned dynamic offsets).
        def clip_body(clip, carry):
            stage_clip(clip, True)
            return carry
        jax.lax.fori_loop(0, n_clips, clip_body, 0)
    else:
        for clip in range(n_clips):                          # small static unroll
            stage_clip(clip, False)

    # One MXU matmul for the whole block: M = n_tok * row_stride rows amortize
    # the (c, c) weight push and pipeline fill across every token.
    acc = jnp.dot(stage_ref[...], w, preferred_element_type=jnp.float32)
    acc = acc + bias                                          # bias added once

    # Scatter per-token result rows back to the lane-major output layout
    # (128-wide, lane-aligned unmasked stores).
    for tok in range(n_tok):
        o_ref[:, tok * c:(tok + 1) * c] = (
            acc[tok * row_stride:tok * row_stride + rows, :].astype(o_ref.dtype))


# -----------------------------------------------------------------------------
# Tiling chooser: lane-aligned clip-group width, row tile toward a ~2 MiB
# block under a v7x-safe VMEM budget, ≥2 parallel grid steps where possible.
# -----------------------------------------------------------------------------
def _choose_tiling(hw, n_batch, n_segment, c, x_itemsize, w_itemsize,
                   block_rows=None,
                   target_block_bytes=2 << 20,
                   vmem_budget_bytes=22 << 20):
    clip_cols = n_segment * c

    # Clip-group widths (in clips) whose lane extent is 128-aligned; the full
    # row (all clips) is always a legal fallback.
    aligned = [b for b in range(1, n_batch + 1)
               if n_batch % b == 0 and (b * clip_cols) % 128 == 0]
    if not aligned:
        aligned = [n_batch]

    def legal_rows(desired):
        desired = max(1, min(int(desired), hw))
        if desired >= hw:
            return hw                      # full dim: always legal block height
        if desired < 16:
            return hw if hw <= 16 else 16
        return (desired // 16) * 16        # multiple of 16: f32- and bf16-safe

    def est_vmem(rows, b):
        cols = b * clip_cols
        stride = _round_up(rows, 16)
        x_block = rows * cols * x_itemsize
        return (4 * x_block                     # 2 in + 2 out pipeline buffers
                + stride * cols * w_itemsize    # staging scratch
                + stride * cols * 4             # f32 matmul result
                + c * c * w_itemsize + 4 * c)   # W + bias

    b = aligned[0]
    if block_rows is None:
        desired = target_block_bytes // max(1, b * clip_cols * x_itemsize)
    else:
        desired = block_rows
    rows = legal_rows(desired)

    # Shrink rows until the estimate fits the (v7x-safe) VMEM budget.
    while est_vmem(rows, b) > vmem_budget_bytes:
        smaller = legal_rows(rows // 2)
        if smaller >= rows:
            break
        rows = smaller

    # Optionally grow the clip-group width toward the block-size target
    # without blowing VMEM and without collapsing all grid parallelism
    # (keep >= 2 parallel steps for megacore / v7x's 2 TensorCores).
    n_row_blocks = pl.cdiv(hw, rows)
    if block_rows is None:
        for b2 in aligned:
            if b2 <= b:
                continue
            if rows * b2 * clip_cols * x_itemsize > target_block_bytes:
                break
            if est_vmem(rows, b2) > vmem_budget_bytes:
                break
            if (n_row_blocks * (n_batch // b) >= 2
                    and n_row_blocks * (n_batch // b2) < 2):
                break
            b = b2

    return rows, b, est_vmem(rows, b)


# -----------------------------------------------------------------------------
# Wrapper: no pad, no output slice — only free reshapes around pallas_call.
# -----------------------------------------------------------------------------
def temporal_shift_vit_forward(x, w_net, b_net, n_segment=3, n_div=8,
                               block_rows=None):
    """x: (hw, nt, c) with hw = h*w + 1 (token 0 = CLS), nt = n_batch*n_segment."""
    hw, nt, c = x.shape
    assert nt % n_segment == 0, "nt must be a multiple of n_segment"
    assert w_net.shape == (c, c) and b_net.shape == (1, c)
    n_batch = nt // n_segment
    fold = c // n_div

    rows, bpb, vmem_est = _choose_tiling(
        hw, n_batch, n_segment, c,
        x.dtype.itemsize, w_net.dtype.itemsize, block_rows=block_rows)

    group_cols = bpb * n_segment * c
    n_groups = n_batch // bpb
    n_tok = bpb * n_segment
    row_stride = _round_up(rows, 16)
    grid = (pl.cdiv(hw, rows), n_groups)

    x2 = x.reshape(hw, nt * c)           # free: collapse trailing dims, no copy

    kernel = functools.partial(_fused_shift_linear_kernel,
                               n_segment=n_segment, fold=fold, c=c)

    cost = pl.CostEstimate(
        flops=2 * hw * nt * c * c,
        transcendentals=0,
        bytes_accessed=(2 * x2.size * x2.dtype.itemsize
                        + w_net.size * w_net.dtype.itemsize),
    )

    vmem_limit = int(min(48 << 20, max(32 << 20, 2 * vmem_est)))

    y2 = pl.pallas_call(
        kernel,
        out_shape=jax.ShapeDtypeStruct((hw, nt * c), x.dtype),
        grid=grid,
        in_specs=[
            pl.BlockSpec((rows, group_cols), lambda i, g: (i, g)),
            pl.BlockSpec((c, c), lambda i, g: (0, 0)),     # W: VMEM-resident
            pl.BlockSpec((1, c), lambda i, g: (0, 0)),     # bias: VMEM-resident
        ],
        out_specs=pl.BlockSpec((rows, group_cols), lambda i, g: (i, g)),
        scratch_shapes=[pltpu.VMEM((n_tok * row_stride, c), w_net.dtype)],
        compiler_params=pltpu.CompilerParams(
            dimension_semantics=("parallel", "parallel"),
            vmem_limit_bytes=vmem_limit),
        cost_estimate=cost,
    )(x2, w_net, b_net)

    return y2.reshape(hw, nt, c)


# -----------------------------------------------------------------------------
# Pure-JAX reference of the PyTorch forward (for correctness check).
# -----------------------------------------------------------------------------
def reference_forward(x, w_net, b_net, n_segment=3, n_div=8):
    hw, nt, c = x.shape
    n_batch = nt // n_segment
    hw_sp = hw - 1
    fold = c // n_div

    cls_tok = x[0:1]
    sp = x[1:]
    sp = jnp.transpose(sp, (1, 2, 0)).reshape(n_batch, n_segment, c, hw_sp)
    out = jnp.zeros_like(sp)
    out = out.at[:, :-1, :fold].set(sp[:, 1:, :fold])
    out = out.at[:, 1:, fold:2 * fold].set(sp[:, :-1, fold:2 * fold])
    out = out.at[:, :, 2 * fold:].set(sp[:, :, 2 * fold:])
    out = out.reshape(nt, c, hw_sp)
    out = jnp.transpose(out, (2, 0, 1))                 # (hw_sp, nt, c)
    out = jnp.concatenate([cls_tok, out], axis=0)       # (hw, nt, c)
    y = jnp.dot(out.reshape(hw * nt, c), w_net,
                precision=jax.lax.Precision.HIGHEST) + b_net
    return y.reshape(hw, nt, c)


if __name__ == "__main__":
    # Small shapes consistent with the module:
    #   h = w = 4 -> hw = 17 (16 spatial tokens + 1 CLS)
    #   n_segment = 3, n_batch = 2 -> nt = 6
    #   c = 128 (lane-dense), n_div = 8 -> fold = 16
    n_segment, n_div = 3, 8
    h = w = 4
    hw = h * w + 1
    n_batch = 2
    nt = n_batch * n_segment
    c = 128

    key = jax.random.PRNGKey(0)
    kx, kw, kb = jax.random.split(key, 3)
    x = jax.random.normal(kx, (hw, nt, c), dtype=jnp.float32)
    # Deterministic stand-in weights for the wrapped `net` (Linear(c -> c)).
    w_net = jax.random.normal(kw, (c, c), dtype=jnp.float32) * 0.05
    b_net = jax.random.normal(kb, (1, c), dtype=jnp.float32) * 0.01

    y_ref = reference_forward(x, w_net, b_net, n_segment=n_segment, n_div=n_div)

    # 1) auto tiling: full-height row block (rows = hw = 17), 2 clip groups.
    y_auto = jax.block_until_ready(
        temporal_shift_vit_forward(x, w_net, b_net,
                                   n_segment=n_segment, n_div=n_div))
    assert y_auto.shape == (hw, nt, c)
    assert jnp.allclose(y_auto, y_ref, atol=2e-4, rtol=2e-4), \
        "f32 (auto tiling) mismatch vs reference"

    # 2) small row tile -> 2x2 grid: exercises the partial edge row block
    #    (hw = 17 not divisible by 16) and masked out-of-bounds output stores.
    y_tile = jax.block_until_ready(
        temporal_shift_vit_forward(x, w_net, b_net, n_segment=n_segment,
                                   n_div=n_div, block_rows=16))
    assert jnp.allclose(y_tile, y_ref, atol=2e-4, rtol=2e-4), \
        "f32 (tiled) mismatch vs reference"

    # 3) bf16 end to end (half the HBM bytes, full-rate MXU, f32 accumulation).
    xb, wb, bb = (v.astype(jnp.bfloat16) for v in (x, w_net, b_net))
    yb = jax.block_until_ready(
        temporal_shift_vit_forward(xb, wb, bb, n_segment=n_segment,
                                   n_div=n_div, block_rows=16))
    yb_ref = reference_forward(xb.astype(jnp.float32), wb.astype(jnp.float32),
                               bb.astype(jnp.float32),
                               n_segment=n_segment, n_div=n_div)
    assert jnp.allclose(yb.astype(jnp.float32), yb_ref, atol=8e-2, rtol=8e-2), \
        "bf16 mismatch vs reference"

    # TODO(synk): the wrapped `net` is an external ViT in the original module;
    # a deterministic token-wise Linear(c->c), fused into the shift kernel, is
    # used as a stand-in here.
    print("KERNEL_OK")
</pallas_src>

<mosaic_0001>
module attributes {stable_mosaic.version = 11 : i64} {
  func.func @_fused_shift_linear_kernel(%arg0: i32, %arg1: i32, %arg2: memref<17x384xf32, #tpu.memory_space<vmem>>, %arg3: memref<128x128xf32, #tpu.memory_space<vmem>>, %arg4: memref<1x128xf32, #tpu.memory_space<vmem>>, %arg5: memref<17x384xf32, #tpu.memory_space<vmem>>, %arg6: memref<96x128xf32, #tpu.memory_space<vmem>>) attributes {dimension_semantics = [#tpu.dimension_semantics<parallel>, #tpu.dimension_semantics<parallel>], iteration_bounds = array<i64: 1, 2>, scalar_prefetch = 0 : i64, scratch_operands = 1 : i64, tpu.core_type = #tpu.core_type<tc>, window_params = [{transform_indices = @transform_0, window_bounds = array<i64: 17, 384>}, {pipeline_mode = #tpu.pipeline_mode<synchronous>, transform_indices = @transform_1, window_bounds = array<i64: 128, 128>}, {pipeline_mode = #tpu.pipeline_mode<synchronous>, transform_indices = @transform_2, window_bounds = array<i64: 1, 128>}, {transform_indices = @transform_3, window_bounds = array<i64: 17, 384>}]} {
    %c0 = arith.constant 0 : index
    %c0_0 = arith.constant 0 : index
    %0 = vector.load %arg3[%c0, %c0_0] : memref<128x128xf32, #tpu.memory_space<vmem>>, vector<128x128xf32>
    %c0_1 = arith.constant 0 : index
    %c0_2 = arith.constant 0 : index
    %1 = vector.load %arg4[%c0_1, %c0_2] : memref<1x128xf32, #tpu.memory_space<vmem>>, vector<1x128xf32>
    %2 = tpu.iota {dimensions = array<i32: 1>} : vector<17x128xi32>
    %3 = tpu.iota {dimensions = array<i32: 0>} : vector<17x128xi32>
    %c17_i32 = arith.constant 17 : i32
    %4 = arith.muli %arg0, %c17_i32 : i32
    %5 = vector.broadcast %4 : i32 to vector<17x128xi32>
    %6 = arith.addi %3, %5 : vector<17x128xi32>
    %c0_i32 = arith.constant 0 : i32
    %7 = vector.broadcast %c0_i32 : i32 to vector<17x128xi32>
    %8 = arith.cmpi ne, %6, %7 : vector<17x128xi32>
    %c16_i32 = arith.constant 16 : i32
    %9 = vector.broadcast %c16_i32 : i32 to vector<17x128xi32>
    %10 = arith.cmpi slt, %2, %9 : vector<17x128xi32>
    %11 = arith.andi %10, %8 : vector<17x128xi1>
    %c16_i32_3 = arith.constant 16 : i32
    %12 = vector.broadcast %c16_i32_3 : i32 to vector<17x128xi32>
    %13 = arith.cmpi sge, %2, %12 : vector<17x128xi32>
    %c32_i32 = arith.constant 32 : i32
    %14 = vector.broadcast %c32_i32 : i32 to vector<17x128xi32>
    %15 = arith.cmpi slt, %2, %14 : vector<17x128xi32>
    %16 = arith.andi %13, %15 : vector<17x128xi1>
    %17 = arith.andi %16, %8 : vector<17x128xi1>
    %c0_4 = arith.constant 0 : index
    %c0_5 = arith.constant 0 : index
    %18 = vector.load %arg2[%c0_4, %c0_5] : memref<17x384xf32, #tpu.memory_space<vmem>>, vector<17x128xf32>
    %c0_6 = arith.constant 0 : index
    %c128 = arith.constant 128 : index
    %19 = vector.load %arg2[%c0_6, %c128] : memref<17x384xf32, #tpu.memory_space<vmem>>, vector<17x128xf32>
    %20 = arith.select %11, %19, %18 : vector<17x128xi1>, vector<17x128xf32>
    %cst = arith.constant 0.000000e+00 : f32
    %21 = vector.broadcast %cst : f32 to vector<17x128xf32>
    %22 = arith.select %17, %21, %20 : vector<17x128xi1>, vector<17x128xf32>
    %c0_7 = arith.constant 0 : index
    %c0_8 = arith.constant 0 : index
    %23 = vector.load %arg6[%c0_7, %c0_8] : memref<96x128xf32, #tpu.memory_space<vmem>>, vector<17x128xf32>
    tpu.vector_store %arg6[%c0_7, %c0_8], %22 {strides = array<i32>} : memref<96x128xf32, #tpu.memory_space<vmem>>, vector<17x128xf32>,
    %c0_9 = arith.constant 0 : index
    %c128_10 = arith.constant 128 : index
    %24 = vector.load %arg2[%c0_9, %c128_10] : memref<17x384xf32, #tpu.memory_space<vmem>>, vector<17x128xf32>
    %c0_11 = arith.constant 0 : index
    %c256 = arith.constant 256 : index
    %25 = vector.load %arg2[%c0_11, %c256] : memref<17x384xf32, #tpu.memory_space<vmem>>, vector<17x128xf32>
    %c0_12 = arith.constant 0 : index
    %c0_13 = arith.constant 0 : index
    %26 = vector.load %arg2[%c0_12, %c0_13] : memref<17x384xf32, #tpu.memory_space<vmem>>, vector<17x128xf32>
    %27 = arith.select %11, %25, %24 : vector<17x128xi1>, vector<17x128xf32>
    %28 = arith.select %17, %26, %27 : vector<17x128xi1>, vector<17x128xf32>
    %c32 = arith.constant 32 : index
    %c0_14 = arith.constant 0 : index
    %29 = vector.load %arg6[%c32, %c0_14] : memref<96x128xf32, #tpu.memory_space<vmem>>, vector<17x128xf32>
    tpu.vector_store %arg6[%c32, %c0_14], %28 {strides = array<i32>} : memref<96x128xf32, #tpu.memory_space<vmem>>, vector<17x128xf32>,
    %c0_15 = arith.constant 0 : index
    %c256_16 = arith.constant 256 : index
    %30 = vector.load %arg2[%c0_15, %c256_16] : memref<17x384xf32, #tpu.memory_space<vmem>>, vector<17x128xf32>
    %c0_17 = arith.constant 0 : index
    %c128_18 = arith.constant 128 : index
    %31 = vector.load %arg2[%c0_17, %c128_18] : memref<17x384xf32, #tpu.memory_space<vmem>>, vector<17x128xf32>
    %cst_19 = arith.constant 0.000000e+00 : f32
    %32 = vector.broadcast %cst_19 : f32 to vector<17x128xf32>
    %33 = arith.select %11, %32, %30 : vector<17x128xi1>, vector<17x128xf32>
    %34 = arith.select %17, %31, %33 : vector<17x128xi1>, vector<17x128xf32>
    %c64 = arith.constant 64 : index
    %c0_20 = arith.constant 0 : index
    %35 = vector.load %arg6[%c64, %c0_20] : memref<96x128xf32, #tpu.memory_space<vmem>>, vector<17x128xf32>
    tpu.vector_store %arg6[%c64, %c0_20], %34 {strides = array<i32>} : memref<96x128xf32, #tpu.memory_space<vmem>>, vector<17x128xf32>,
    %c0_21 = arith.constant 0 : index
    %c0_22 = arith.constant 0 : index
    %36 = vector.load %arg6[%c0_21, %c0_22] : memref<96x128xf32, #tpu.memory_space<vmem>>, vector<96x128xf32>
    %cst_23 = arith.constant dense<0.000000e+00> : vector<96x128xf32>
    %37 = tpu.matmul %36, %0, %cst_23 {dimension_numbers = #tpu.dot_dimension_numbers<[1], [0], [0], [1], [0, 0, 1, 1], [], []>} : vector<96x128xf32>, vector<128x128xf32>, vector<96x128xf32> -> vector<96x128xf32>
    %38 = vector.broadcast %1 : vector<1x128xf32> to vector<96x128xf32>
    %39 = arith.addf %37, %38 : vector<96x128xf32>
    %40 = vector.extract_strided_slice %39 {offsets = [0, 0], sizes = [17, 128], strides = [1, 1]} : vector<96x128xf32> to vector<17x128xf32>
    %c0_24 = arith.constant 0 : index
    %c0_25 = arith.constant 0 : index
    %41 = vector.load %arg5[%c0_24, %c0_25] : memref<17x384xf32, #tpu.memory_space<vmem>>, vector<17x128xf32>
    tpu.vector_store %arg5[%c0_24, %c0_25], %40 {strides = array<i32>} : memref<17x384xf32, #tpu.memory_space<vmem>>, vector<17x128xf32>,
    %42 = vector.extract_strided_slice %39 {offsets = [32, 0], sizes = [17, 128], strides = [1, 1]} : vector<96x128xf32> to vector<17x128xf32>
    %c0_26 = arith.constant 0 : index
    %c128_27 = arith.constant 128 : index
    %43 = vector.load %arg5[%c0_26, %c128_27] : memref<17x384xf32, #tpu.memory_space<vmem>>, vector<17x128xf32>
    tpu.vector_store %arg5[%c0_26, %c128_27], %42 {strides = array<i32>} : memref<17x384xf32, #tpu.memory_space<vmem>>, vector<17x128xf32>,
    %44 = vector.extract_strided_slice %39 {offsets = [64, 0], sizes = [17, 128], strides = [1, 1]} : vector<96x128xf32> to vector<17x128xf32>
    %c0_28 = arith.constant 0 : index
    %c256_29 = arith.constant 256 : index
    %45 = vector.load %arg5[%c0_28, %c256_29] : memref<17x384xf32, #tpu.memory_space<vmem>>, vector<17x128xf32>
    tpu.vector_store %arg5[%c0_28, %c256_29], %44 {strides = array<i32>} : memref<17x384xf32, #tpu.memory_space<vmem>>, vector<17x128xf32>,
    return
  }
  func.func @transform_0(%arg0: i32, %arg1: i32) -> (i32, i32) {
    %c0_i32 = arith.constant 0 : i32
    return %arg0, %arg1 : i32, i32
  }
  func.func @transform_1(%arg0: i32, %arg1: i32) -> (i32, i32) {
    %c0_i32 = arith.constant 0 : i32
    %c0_i32_0 = arith.constant 0 : i32
    %c0_i32_1 = arith.constant 0 : i32
    return %c0_i32, %c0_i32_0 : i32, i32
  }
  func.func @transform_2(%arg0: i32, %arg1: i32) -> (i32, i32) {
    %c0_i32 = arith.constant 0 : i32
    %c0_i32_0 = arith.constant 0 : i32
    %c0_i32_1 = arith.constant 0 : i32
    return %c0_i32, %c0_i32_0 : i32, i32
  }
  func.func @transform_3(%arg0: i32, %arg1: i32) -> (i32, i32) {
    %c0_i32 = arith.constant 0 : i32
    return %arg0, %arg1 : i32, i32
  }
}

</mosaic_0001>

<bundles_post_ra>
// kernel: tpu_custom_call.1
= control target key start
LH: loop header
LB: loop body
LE: loop exit
PB: predicated region body
PF: predicated region fallthrough
CT: control target
= control target key end

     0   :  { %8 = vsyncpa [#allocation4], 0  ;;  %s1273_s0 = inlined_call_operand.hbm [shape: f32[17,768], index: 0, kind: input, shape index: {}]   ;;  %s1274_s1 = inlined_call_operand.hbm [shape: f32[128,128], index: 1, kind: input, shape index: {}]   ;;  %s1275_s2 = inlined_call_operand.vmem [shape: f32[1,128], index: 2, kind: input, shape index: {}]   ;;  %s1276_s3 = inlined_call_operand.hbm [shape: f32[17,768], index: 3, kind: output, shape index: {}]  }
   0x1   :  { %10 = vsyncpa [#allocation4 + $0x1], 0 }
   0x2   :  { %11 = vsyncpa [#allocation7], 0 }
   0x3   :  { %12 = vsyncpa [#allocation5], 0 }
   0x4   :  { %14 = vsyncpa [#allocation5 + $0x1], 0  ;;  %s961_s12 = smov 0   ;;  %s963_s13 = smov 0  }
   0x5   :  { %s965_s14 = smov 0   ;;  %s967_s15 = smov 0  }
   0x6   :  { %s969_s16 = smov 0   ;;  %s971_s17 = smov 0  }
   0x7 LB: > { %1285 = sst [smem:[#allocation12_spill]] %s908_s12  ;;  %s579_s18 = sadd.s32 4294967295, %s928_s17   ;;  %s928_s17 = sphi %s971_s17, %s20_s17   ;;  %s924_s16 = sphi %s969_s16, %s1317_s16   ;;  %s920_s15 = sphi %s967_s15, %s1316_s15   ;;  %s916_s14 = sphi %s965_s14, %s1315_s14   ;;  %s912_s13 = sphi %s963_s13, %s1314_s13   ;;  %s908_s12 = sphi %s961_s12, %s1313_s12  }
   0x8   : > { %1286 = sst [smem:[#allocation13_spill]] %s928_s17  ;;  %s580_s19 = sadd.s32 4294967294, %s928_s17  }
   0x9   : > { %p48_p0 = scmp.ne.s32.totalorder %s916_s14, %s912_s13  ;;  %p49_p1 = scmp.eq.s32.totalorder %s928_s17, 0 }
   0xa   : > { %p54_p2 = scmp.ne.s32.totalorder %s912_s13, %s908_s12  ;;  %p999_p3 = scmp.eq.s32.totalorder %s579_s18, 0 }
   0xb   : > { %p122_p4 = scmp.eq.s32.totalorder %s579_s18, 1  ;;  %p1003_p5 = por %p49_p1, %p48_p0 }
   0xc   : > { %s1287_s21 = scalar_select %p999_p3, 1, 0 }
   0xd   : > { %p128_p6 = scmp.eq.s32.totalorder %s580_s19, 1  ;;  %p1009_p7 = por %p999_p3, %p54_p2 }
   0xe   : > { %p1013_p8 = por %p122_p4, %p48_p0  ;;  %p581_p10 = scmp.ge.s32.totalorder %s928_s17, 1 }
   0xf   : > { %s1289_s23 = scalar_select %p1009_p7, 1, 0 }
  0x10   : > { %s1290_s24 = scalar_select %p1013_p8, 1, 0 }
  0x11   : > { %p1017_p9 = por %p128_p6, %p54_p2  ;;  %p135_p11 = scmp.lt.s32.totalorder %s928_s17, 3 }
  0x12   : > { %s930_s27 = smov [#allocation6]   ;;  %p726_p1 = scmp.lt.s32.totalorder %s928_s17, 2 }
  0x13   : > { %s1291_s25 = scalar_select %p1017_p9, 1, 0 }
  0x14   : > { %p1023_p12 = pnand %p581_p10, %p135_p11  ;;  %s147_s28 = sshll.u32 %s930_s27, 4  ;;  %s148_s28 = int_to_ptr.vmem [resolvable:$true] %s147_s28 }
  0x15   : > { %1292 = sst [smem:[#allocation14_spill]] %s1291_s25  ;;  %p1039_p2 = pnand %p726_p1, %p1003_p5 }
  0x16   : > { %p713_p13 = pneg %p1023_p12  ;;  %s29_s4 = sadd.s32 1, %s924_s16 }
  0x17   : > { %p1044_p6 = scmp.ge.s32.totalorder %s29_s4, 2  ;;  %s801_s6 = scalar_lea.vmem %s148_s28, 2048 }
  0x18   : > { %p1033_p4 = pnand %p713_p13, %p999_p3  ;;  %p802_p11 = scmp.ne.s32.totalorder %s148_s28, %s801_s6 }
  0x19   : > { %p809_p9 = scmp.lt.s32.totalorder %s148_s28, %s148_s28  ;;  %p810_p8 = scmp.lt.s32.totalorder %s801_s6, %s801_s6 }
  0x1a   : > { %p792_p10 = pneg %p1033_p4 }
  0x1b   : > { %p811_p3 = por %p810_p8, %p809_p9 }
  0x1c   : > { %p804_p0 = pnand %p802_p11, %p792_p10 }
  0x1e   : > { %p805_p13 = pneg %p804_p0 }
  0x20   : > { %p812_p7 = pnand %p811_p3, %p805_p13 }
  0x22   : > { %815 = shalt.err (!%p812_p7)
}
  0x23   : > { %s931_s7 = smov 128   ;;  %s932_s8 = smov 8  }
  0x24   : > { %716 = dma.hbm_to_vmem [thread:$0]  (!%p1033_p4), %s1274_s1, 2048, %s148_s28, [#allocation7], %s931_s7, %s931_s7, %s932_s8  }
  0x25   : > { %s164_s11 = sand.u32 1, %s916_s14   ;;  %s1319_s4 = smov (%p1044_p6, %s29_s4), 0 }
  0x26   : > { %s703_s18 = smul.u32 72, %s164_s11  ;;  %s37_s19 = ssub.s32 %s924_s16, %s1319_s4 }
  0x27   : > { %s591_s22 = smul.u32 384, %s924_s16  ;;  %p39_p3 = scmp.eq.s32.totalorder %s37_s19, 0 }
  0x28   : > { %s168_s17 = scalar_lea.vmem [#allocation3], %s703_s18  ;;  %s1297_s29 = sadd.s32 1, %s916_s14 }
  0x29   : > { %s177_s20 = scalar_lea.hbm %s1273_s0, %s591_s22  ;;  %s178_s25 = sshll.u32 %s168_s17, 4  ;;  %s179_s25 = int_to_ptr.vmem [resolvable:$true] %s178_s25 }
  0x2a   : > { %s1069_s12 = scalar_select %p39_p3, %s916_s14, %s1297_s29  }
  0x2b   : > { %s165_s28 = scalar_lea.sflag [#allocation4], %s164_s11  ;;  %p818_p5 = pneg %p1039_p2 }
  0x2c   : > { %s829_s5 = scalar_lea.vmem %s179_s25, 1152  ;;  %s933_s7 = smov [#allocation3]  }
  0x2d   : > { %p830_p7 = scmp.ne.s32.totalorder %s179_s25, %s829_s5  ;;  %s834_s8 = sshll.u32 %s933_s7, 4  ;;  %s835_s8 = int_to_ptr.vmem [resolvable:$false] %s834_s8 }
  0x2e   : > { %s836_s9 = scalar_lea.vmem %s835_s8, 2304  ;;  %p837_p0 = scmp.lt.s32.totalorder %s179_s25, %s835_s8 }
  0x2f   : > { %p832_p8 = pnand %p830_p7, %p818_p5  ;;  %p838_p1 = scmp.lt.s32.totalorder %s836_s9, %s829_s5 }
  0x31   : > { %p833_p9 = pneg %p832_p8  ;;  %p839_p4 = por %p838_p1, %p837_p0 }
  0x33   : > { %p840_p6 = pnand %p839_p4, %p833_p9 }
  0x35   : > { %843 = shalt.err (!%p840_p6)
}
  0x36   : > { %s934_s17 = smov 768   ;;  %s935_s10 = smov 384  }
  0x37   : > { %s936_s18 = smov 24   ;;  %190 = sbr.rel (%p1023_p12) target bundleno = 319 (0x13f), region = 32 }
  0x38   : > { %720 = dma.hbm_to_vmem [thread:$0]  (!%p1039_p2), %s177_s20, 1152, %s179_s25, %s165_s28, %s934_s17, %s935_s10, %s936_s18  }
  0x39   : > { %s1078_s11 = sand.u32 (!%p1023_p12), 1, %s912_s13   ;;  %p1298_p10 = scmp.ne.s32.totalorder (!%p1023_p12), %s1289_s23, 0 }
  0x3a   : > { %s704_s19 = smul.u32 (!%p1023_p12), 72, %s1078_s11  ;;  %s193_s22 = scalar_lea.sflag (!%p1023_p12), [#allocation4], %s1078_s11 }
  0x3c   : > { %s1084_s27 = scalar_lea.vmem [#allocation3], %s704_s19 }
  0x3d   : > { %895 = dma.done.wait (%p1298_p10), %s193_s22, 1152  }
  0x3e   : > { %897 = vsyncadd (%p1298_p10), %s193_s22, 4294966144  ;;  %p1299_p2 = scmp.ne.s32.totalorder %s1287_s21, 0 }
  0x40   : > { %899 = dma.done.wait (%p1299_p2), [#allocation7], 2048  }
  0x41   : > { %901 = vsyncadd (%p1299_p2), [#allocation7], 4294965248  ;;  %v244_v0 = vlaneseq  ;;  %v242_v3 = vld [vmem:[#allocation6 + $0x78] sm:$0xff]  ;;  %v241_v4 = vld [vmem:[#allocation6 + $0x70] sm:$0xff]  ;;  %s222_s23 = scalar_lea.vmem [#allocation8], %s704_s19  ;;  %s592_s26 = smul.u32 384, %s920_s15 }
  0x42   : > { %621 = vmatprep.subr.mxu0 %v242_v3  ;;  %671 = vmatprep.subr.mxu1 %v242_v3  ;;  %v240_v5 = vld [vmem:[#allocation6 + $0x68] sm:$0xff]  ;;  %v239_v7 = vld [vmem:[#allocation6 + $0x60] sm:$0xff]  ;;  %v238_v9 = vld [vmem:[#allocation6 + $0x58] sm:$0xff]  ;;  %s482_s25 = sshll.u32 %s222_s23, 4  ;;  %s466_s29 = scalar_lea.sflag [#allocation5], %s1078_s11  ;;  %s1220_s25 = int_to_ptr.vmem [resolvable:$true] %s482_s25 }
  0x43   : > { %v247_v1 = vshrl.u32 %v244_v0, 7  ;;  %v1094_v2 = vand.u32 127, %v244_v0  ;;  %622 = vmatpush3.msra.mxu0 %v242_v3  ;;  %687 = vmatpush3.msra.mxu1 %v242_v3  ;;  %v1118_v11 = vld [vmem:[%s1084_s27] sm:$0xff]  ;;  %v1121_v12 = vld [vmem:[%s1084_s27 + $0x8] sm:$0xff]  ;;  %v285_v13 = vld [vmem:[%s1084_s27 + $0x38] sm:$0x1]  ;;  %s1225_s15 = scalar_lea.hbm %s1276_s3, %s592_s26 }
  0x44   : > { %623 = vmatprep.subr.mxu0 %v241_v4  ;;  %672 = vmatprep.subr.mxu1 %v241_v4  ;;  %v288_v14 = vld [vmem:[%s1084_s27 + $0x40] sm:$0x1]  ;;  %v291_v16 = vld [vmem:[%s1084_s27 + $0x30] sm:$0x1]  ;;  %v1133_v18 = vld [vmem:[%s1084_s27 + $0x18] sm:$0xff]  ;;  %s844_s28 = scalar_lea.vmem %s1220_s25, 1152 }
  0x45   : > { %vm255_vm0 = vcmp.ne.s32.totalorder %v247_v1, 0  ;;  %vm262_vm1 = vcmp.ge.s32.totalorder %v1094_v2, 16  ;;  %vm263_vm2 = vcmp.lt.s32.totalorder %v1094_v2, 32  ;;  %vm258_vm3 = vcmp.lt.s32.totalorder %v1094_v2, 16  ;;  %624 = vmatpush3.msra.mxu0 %v241_v4  ;;  %688 = vmatpush3.msra.mxu1 %v241_v4  ;;  %v1136_v19 = vld [vmem:[%s1084_s27 + $0x20] sm:$0xff]  ;;  %v301_v26 = vld [vmem:[%s1084_s27 + $0x10] sm:$0xff]  ;;  %p845_p12 = scmp.ne.s32.totalorder %s1220_s25, %s844_s28 }
  0x46   : > { %vm1102_vm4 = vmand %vm258_vm3, %vm255_vm0  ;;  %625 = vmatprep.subr.mxu0 %v240_v5  ;;  %673 = vmatprep.subr.mxu1 %v240_v5  ;;  %v294_v17 = vsel %vm258_vm3, %v288_v14, %v285_v13  ;;  %v237_v20 = vld [vmem:[#allocation6 + $0x50] sm:$0xff]  ;;  %v1144_v22 = vsel %vm258_vm3, %v1136_v19, %v1133_v18  ;;  %v270_v23 = vld [vmem:[%s1084_s27 + $0x30] sm:$0x1]  ;;  %p1306_p11 = scmp.ne.s32.totalorder %s1290_s24, 0  ;;  %s937_s5 = smov [#allocation8]  }
  0x47   : > { %vm1106_vm5 = vmand %vm262_vm1, %vm263_vm2  ;;  %626 = vmatpush3.msra.mxu0 %v240_v5  ;;  %689 = vmatpush3.msra.mxu1 %v240_v5  ;;  %v274_v15 = vsel %vm1102_vm4, %v1121_v12, %v1118_v11  ;;  %v273_v24 = vld [vmem:[%s1084_s27 + $0x38] sm:$0x1]  ;;  %v302_v27 = vld [vmem:[%s1084_s27 + $0x28] sm:$0xff]  ;;  %v307_v30 = vsel %vm1102_vm4, 0.0, %v301_v26  ;;  %v292_v32 = vsel %vm1102_vm4, %v301_v26, %v1121_v12  ;;  %s848_s7 = sshll.u32 %s937_s5, 4  ;;  %s849_s7 = int_to_ptr.vmem [resolvable:$false] %s848_s7 }
  0x48   : > { %vm1113_vm6 = vmand %vm1106_vm5, %vm255_vm0  ;;  %627 = vmatprep.subr.mxu0 %v239_v7  ;;  %674 = vmatprep.subr.mxu1 %v239_v7  ;;  %v297_v21 = vsel %vm1106_vm5, %v291_v16, %v294_v17  ;;  %v276_v25 = vsel %vm258_vm3, %v273_v24, %v270_v23  ;;  %v236_v28 = vld [vmem:[#allocation6 + $0x48] sm:$0xff]  ;;  %v1158_v31 = vsel %vm258_vm3, 0.0, %v302_v27  ;;  %v303_v33 = vld [vmem:[%s1084_s27 + $0x40] sm:$0x1]  ;;  %v1186_v41 = vsel %vm258_vm3, %v302_v27, %v1136_v19  ;;  %p846_p13 = pnand %p845_p12, %p1306_p11  ;;  %s850_s8 = scalar_lea.vmem %s849_s7, 2304 }
  0x49   : > { %628 = vmatpush3.msra.mxu0 %v239_v7  ;;  %690 = vmatpush3.msra.mxu1 %v239_v7  ;;  %300 = vst [vmem:[#allocation2 + $0x28] sm:$0x1] %v297_v21  ;;  %v279_v29 = vsel %vm1106_vm5, 0.0, %v276_v25  ;;  %v1167_v34 = vsel %vm1113_vm6, %v1121_v12, %v307_v30  ;;  %v311_v35 = vsel %vm1106_vm5, %v1136_v19, %v1158_v31  ;;  %v306_v37 = vld [vmem:[%s1084_s27 + $0x38] sm:$0x1]  ;;  %v309_v38 = vsel %vm258_vm3, 0.0, %v303_v33  ;;  %vm786_vm7 = vmneg %vm1113_vm6  ;;  %p851_p5 = scmp.lt.s32.totalorder %s1220_s25, %s849_s7  ;;  %p852_p7 = scmp.lt.s32.totalorder %s850_s8, %s844_s28 }
  0x4a   : > { %629 = vmatprep.subr.mxu0 %v238_v9  ;;  %675 = vmatprep.subr.mxu1 %v238_v9  ;;  %282 = vst [vmem:[#allocation2 + $0x58] sm:$0x1] %v279_v29  ;;  %v1176_v36 = vsel %vm1113_vm6, %v1118_v11, %v292_v32  ;;  %v235_v39 = vld [vmem:[#allocation6 + $0x40] sm:$0xff]  ;;  %v312_v40 = vsel %vm1106_vm5, %v306_v37, %v309_v38  ;;  %v234_v43 = vld [vmem:[#allocation6 + $0x38] sm:$0xff]  ;;  %v233_v44 = vld [vmem:[#allocation6 + $0x30] sm:$0xff]  ;;  %p847_p3 = pneg %p846_p13 }
  0x4b   : > { %630 = vmatpush3.msra.mxu0 %v238_v9  ;;  %691 = vmatpush3.msra.mxu1 %v238_v9  ;;  %315 = vst [vmem:[#allocation2 + $0x30] sm:$0x1] %v312_v40  ;;  %v296_v42 = vsel %vm1106_vm5, %v1133_v18, %v1186_v41  ;;  %v232_v45 = vld [vmem:[#allocation6 + $0x28] sm:$0xff]  ;;  %v231_v46 = vld [vmem:[#allocation6 + $0x20] sm:$0xff]  ;;  %v230_v47 = vld [vmem:[#allocation6 + $0x18] sm:$0xff]  ;;  %p853_p8 = por %p852_p7, %p851_p5 }
  0x4c   : > { %631 = vmatprep.subr.mxu0 %v237_v20  ;;  %676 = vmatprep.subr.mxu1 %v237_v20  ;;  %v229_v48 = vld [vmem:[#allocation6 + $0x10] sm:$0xff]  ;;  %v228_v49 = vld [vmem:[#allocation6 + $0x8] sm:$0xff]  ;;  %v227_v50 = vld [vmem:[#allocation6] sm:$0xff] }
  0x4d   : > { %632 = vmatpush3.msra.mxu0 %v237_v20  ;;  %692 = vmatpush3.msra.mxu1 %v237_v20  ;;  %v323_v52 = vld [vmem:[#allocation2 + $0x10] sm:$0xff]  ;;  %vm788_vm8 = vmneg %vm1106_vm5  ;;  %v319_v54 = vld [vmem:[#allocation2 + $0x18] sm:$0xff]  ;;  %p854_p9 = pnand %p853_p8, %p847_p3 }
  0x4e   : > { %633 = vmatprep.subr.mxu0 %v236_v28  ;;  %677 = vmatprep.subr.mxu1 %v236_v28  ;;  %v327_v56 = vld [vmem:[#allocation2 + $0x50] sm:$0xff]  ;;  %v587_v57 = vld [vmem:[%s1275_s2] ss:$0 sm:$0xff] }
  0x4f   : > { %634 = vmatpush3.msra.mxu0 %v236_v28  ;;  %693 = vmatpush3.msra.mxu1 %v236_v28 }
  0x50   : > { %635 = vmatprep.subr.mxu0 %v235_v39  ;;  %678 = vmatprep.subr.mxu1 %v235_v39  ;;  %v322_v51 = vld [vmem:[#allocation2 + $0x28] sm:$0xff] }
  0x51   : > { %636 = vmatpush3.msra.mxu0 %v235_v39  ;;  %694 = vmatpush3.msra.mxu1 %v235_v39  ;;  %v318_v53 = vld [vmem:[#allocation2 + $0x58] sm:$0xff] }
  0x52   : > { %637 = vmatprep.subr.mxu0 %v234_v43  ;;  %679 = vmatprep.subr.mxu1 %v234_v43  ;;  %v326_v55 = vld [vmem:[#allocation2 + $0x30] sm:$0xff] }
  0x53   : > { %638 = vmatpush3.msra.mxu0 %v234_v43  ;;  %695 = vmatpush3.msra.mxu1 %v234_v43 }
  0x54   : > { %639 = vmatprep.subr.mxu0 %v233_v44  ;;  %680 = vmatprep.subr.mxu1 %v233_v44 }
  0x55   : > { %640 = vmatpush3.msra.mxu0 %v233_v44  ;;  %696 = vmatpush3.msra.mxu1 %v233_v44 }
  0x56   : > { %641 = vmatprep.subr.mxu0 %v232_v45  ;;  %681 = vmatprep.subr.mxu1 %v232_v45 }
  0x57   : > { %642 = vmatpush3.msra.mxu0 %v232_v45  ;;  %697 = vmatpush3.msra.mxu1 %v232_v45 }
  0x58   : > { %643 = vmatprep.subr.mxu0 %v231_v46  ;;  %682 = vmatprep.subr.mxu1 %v231_v46 }
  0x59   : > { %644 = vmatpush3.msra.mxu0 %v231_v46  ;;  %698 = vmatpush3.msra.mxu1 %v231_v46 }
  0x5a   : > { %645 = vmatprep.subr.mxu0 %v230_v47  ;;  %683 = vmatprep.subr.mxu1 %v230_v47 }
  0x5b   : > { %646 = vmatpush3.msra.mxu0 %v230_v47  ;;  %699 = vmatpush3.msra.mxu1 %v230_v47 }
  0x5c   : > { %647 = vmatprep.subr.mxu0 %v229_v48  ;;  %684 = vmatprep.subr.mxu1 %v229_v48 }
  0x5d   : > { %648 = vmatpush3.msra.mxu0 %v229_v48  ;;  %700 = vmatpush3.msra.mxu1 %v229_v48 }
  0x5e   : > { %649 = vmatprep.subr.mxu0 %v228_v49  ;;  %685 = vmatprep.subr.mxu1 %v228_v49 }
  0x5f   : > { %650 = vmatpush3.msra.mxu0 %v228_v49  ;;  %701 = vmatpush3.msra.mxu1 %v228_v49 }
  0x60   : > { %651 = vmatprep.subr.mxu0 %v227_v50  ;;  %686 = vmatprep.subr.mxu1 %v227_v50 }
  0x61   : > { %652 = vmatpush3.msra.mxu0 %v227_v50  ;;  %702 = vmatpush3.msra.mxu1 %v227_v50 }
  0x62   : > { %787 = vmatprep.mubr.msk.f32.mxu0 %vm786_vm7, %v274_v15  ;;  %662 = vmatprep.mubr.f32.mxu1 %v322_v51 }
  0x63   : > { %789 = vmatmul.mubr.msk.f32.vlgmr.msra.gmra.mxu0 %vm788_vm8, %v1144_v22  ;;  %663 = vmatmul.mubr.f32.vlgmr.msra.gmra.mxu1 %v323_v52 }
  0x64   : > { %656 = vmatprep.mubr.f32.mxu0 %v318_v53  ;;  %665 = vmatprep.mubr.f32.mxu1 %v1167_v34 }
  0x67   : > { %657 = vmatmul.mubr.f32.gmra.mxu0 %v319_v54  ;;  %666 = vmatmul.mubr.f32.gmra.mxu1 %v311_v35 }
  0x68   : > { %659 = vmatprep.mubr.f32.mxu0 %v1176_v36  ;;  %668 = vmatprep.mubr.f32.mxu1 %v326_v55 }
  0x6b   : > { %660 = vmatmul.mubr.f32.gmra.mxu0 %v296_v42  ;;  %669 = vmatmul.mubr.f32.gmra.mxu1 %v327_v56 }
 0x123   : > { %v655_v58 = vpop.f32.mrf.mxu0  ;;  %v664_v59 = vpop.f32.mrf.mxu1 }
 0x124   : > { %v406_v60 = vadd.f32 %v655_v58, %v587_v57 }
 0x125   : > { %v400_v61 = vpop.f32.mrf.mxu0  ;;  %v429_v62 = vpop.f32.mrf.mxu1 }
 0x126   : > { %457 = vst [vmem:[%s222_s23 + $0x18] sm:$0xff] %v406_v60  ;;  %v401_v63 = vadd.f32 %v587_v57, %v400_v61  ;;  %v430_v0 = vadd.f32 %v587_v57, %v429_v62 }
 0x127   : > { %v658_v1 = vpop.f32.mrf.mxu0  ;;  %v667_v2 = vpop.f32.mrf.mxu1 }
 0x128   : > { %456 = vst [vmem:[%s222_s23] sm:$0xff] %v401_v63  ;;  %461 = vst [vmem:[%s222_s23 + $0x38] sm:$0x1] %v430_v0  ;;  %v444_v3 = vadd.f32 %v667_v2, %v587_v57 }
 0x129   : > { %v410_v4 = vpop.f32.mrf.mxu0  ;;  %v438_v5 = vpop.f32.mrf.mxu1 }
 0x12a   : > { %463 = vst [vmem:[%s222_s23 + $0x28] sm:$0xff] %v444_v3  ;;  %v411_v6 = vadd.f32 %v587_v57, %v410_v4  ;;  %v439_v7 = vadd.f32 %v587_v57, %v438_v5 }
 0x12b   : > { %v661_v8 = vpop.f32.mrf.mxu0  ;;  %v670_v9 = vpop.f32.mrf.mxu1 }
 0x12c   : > { %458 = vst [vmem:[%s222_s23 + $0x30] sm:$0x1] %v411_v6  ;;  %462 = vst [vmem:[%s222_s23 + $0x10] sm:$0xff] %v439_v7  ;;  %v425_v10 = vadd.f32 %v661_v8, %v587_v57 }
 0x12d   : > { %v419_v11 = vpop.f32.mrf.mxu0  ;;  %v448_v12 = vpop.f32.mrf.mxu1 }
 0x12e   : > { %460 = vst [vmem:[%s222_s23 + $0x20] sm:$0xff] %v425_v10  ;;  %v420_v13 = vadd.f32 %v587_v57, %v419_v11  ;;  %v449_v14 = vadd.f32 %v587_v57, %v448_v12 }
 0x130   : > { %459 = vst [vmem:[%s222_s23 + $0x8] sm:$0xff] %v420_v13  ;;  %464 = vst [vmem:[%s222_s23 + $0x40] sm:$0x1] %v449_v14 }
 0x131   : > { %857 = shalt.err (!%p854_p9)
}
 0x132   : > { %s858_s9 = scalar_lea.hbm %s1225_s15, 1152  ;;  %s862_s18 = scalar_lea.hbm %s1276_s3, 2304 }
 0x133   : > { %p859_p0 = scmp.ne.s32.totalorder %s1225_s15, %s858_s9  ;;  %p863_p6 = scmp.lt.s32.totalorder %s1225_s15, %s1276_s3 }
 0x134   : > { %p864_p10 = scmp.lt.s32.totalorder %s862_s18, %s858_s9 }
 0x135   : > { %p860_p1 = pnand %p859_p0, %p1306_p11 }
 0x136   : > { %p865_p2 = por %p864_p10, %p863_p6 }
 0x137   : > { %p861_p4 = pneg %p860_p1 }
 0x139   : > { %p866_p12 = pnand %p865_p2, %p861_p4 }
 0x13b   : > { %869 = shalt.err (!%p866_p12)
}
 0x13c   : > { %s938_s27 = smov 384   ;;  %s939_s20 = smov 768  }
 0x13d   : > { %s940_s21 = smov 24  }
 0x13e   : > { %711 = dma.vmem_to_hbm [thread:$0]  (%p1306_p11), %s1220_s25, 1152, %s1225_s15, %s466_s29, %s938_s27, %s939_s20, %s940_s21  }
 0x13f PF: > { %s1307_s23 = sld [smem:[#allocation12_spill]] }
 0x140   : > { %s1308_s26 = sld [smem:[#allocation14_spill]] }
 0x141   : > { %s1309_s30 = sld [smem:[#allocation13_spill]] }
 0x145   : > { %s497_s6 = sand.u32 1, %s1307_s23  }
 0x146   : > { %p1310_p13 = scmp.ne.s32.totalorder %s1308_s26, 0  ;;  %s498_s28 = scalar_lea.sflag [#allocation5], %s497_s6 }
 0x147   : > { %p1311_p3 = scmp.ge.s32.totalorder %s1309_s30, 2 }
 0x149   : > { %p722_p5 = pnand %p1311_p3, %p1310_p13 }
 0x14b   : > { %p723_p7 = pneg %p722_p5 }
 0x14d   : > { %903 = dma.done.wait (%p723_p7), %s498_s28, 1152  }
 0x14e   : > { %905 = vsyncadd (%p723_p7), %s498_s28, 4294966144  ;;  %s20_s17 = sadd.s32 1, %s1309_s30   ;;  %s1312_s24 = smov %s1069_s12 }
 0x14f   : > { %p17_p8 = scmp.ge.s32.totalorder %s20_s17, 4   ;;  %s1313_s12 = smov %s912_s13 }
 0x150   : > { %s1314_s13 = smov %s916_s14  ;;  %s1315_s14 = smov %s1312_s24 }
 0x151   : > { %s1316_s15 = smov %s924_s16  ;;  %s1317_s16 = smov %s1319_s4 }
 0x152   :  { %19 = sbr.rel (!%p17_p8) target bundleno = 7 (0x7), region = 81 }
 0x157   :  { %503 = vsyncpa [#allocation4], 1 }
 0x158   :  { %505 = vsyncpa [#allocation4 + $0x1], 1 }
 0x159   :  { %506 = vsyncpa [#allocation7], 1 }
 0x15a   :  { %507 = vsyncpa [#allocation5], 1 }
 0x15b   :  { %509 = vsyncpa [#allocation5 + $0x1], 1 }

</bundles_post_ra>
